<compile_context>
chip_gen: v7x
topology: tpu7x:2x2x1
jax: 0.10.0
libtpu: 0.0.40
codegen_flags: <defaults>
</compile_context>

<pallas_src>
import functools
import math

import jax
import jax.numpy as jnp
from jax import lax
from jax.experimental import pallas as pl
from jax.experimental.pallas import tpu as pltpu

_INV_SQRT2 = 1.0 / math.sqrt(2.0)
_SQRT_2_OVER_PI = math.sqrt(2.0 / math.pi)


def _cdiv(a, b):
    return (a + b - 1) // b


def _round_up(x, m):
    return ((x + m - 1) // m) * m


# ----------------------------------------------------------------------------- kernel
def _ffn_kernel(x_ref, w1_ref, b1_ref, w2_ref, b2_ref, o_ref, acc_ref, *, approximate_gelu):
    k = pl.program_id(1)

    @pl.when(k == 0)
    def _():
        acc_ref[...] = jnp.zeros_like(acc_ref)

    x = x_ref[...]                                                     # (tm, dim)
    # First linear (partial along hidden): (tm, dim) @ (dim, th) -> f32 accumulate on MXU.
    h = jnp.dot(x, w1_ref[...], preferred_element_type=jnp.float32)
    h = h + b1_ref[...].astype(jnp.float32)                            # (tm, th)
    if approximate_gelu:
        # tanh approximation: single EUP tanh instead of the long erf polynomial on the VPU.
        h = 0.5 * h * (1.0 + jnp.tanh(_SQRT_2_OVER_PI * (h + 0.044715 * h * h * h)))
    else:
        # Exact GELU (PyTorch nn.GELU default): 0.5 * x * (1 + erf(x / sqrt(2))).
        h = 0.5 * h * (1.0 + lax.erf(h * _INV_SQRT2))
    # Dropout(p=0.0) is the identity -> no-op.
    # Second linear, accumulated over hidden tiles into the f32 scratch accumulator.
    acc_ref[...] += jnp.dot(h.astype(w2_ref.dtype), w2_ref[...],
                            preferred_element_type=jnp.float32)

    @pl.when(k == pl.num_programs(1) - 1)
    def _():
        o_ref[...] = (acc_ref[...] + b2_ref[...].astype(jnp.float32)).astype(o_ref.dtype)


# ----------------------------------------------------------------------------- tuning helpers
def _chip_config():
    """Per-generation defaults derived from the TPU's VMEM capacity (and chip name if exposed)."""
    vmem_cap = 64 * 2**20
    name = ""
    try:
        info = pltpu.get_tpu_info()
        vmem_cap = int(info.vmem_capacity_bytes)
        name = str(getattr(info, "chip_version", "")).lower()
    except Exception:
        pass
    hard_cap = int(min(0.85 * vmem_cap, 110 * 2**20))   # never ask for the full physical VMEM
    if vmem_cap <= 64 * 2**20:
        # v7x: 64 MiB VMEM per TC, 2 TensorCores, ~3.2 TB/s HBM -> smaller th, bigger tm, 2 buffers.
        return dict(tm=512, th=256, wbuf=2, two_tc=True, hard_cap=hard_cap)
    if "5" in name:
        # v5e: MXU-bound around tm~256-384; spend spare VMEM on deeper weight buffering.
        return dict(tm=384, th=512, wbuf=3, two_tc=False, hard_cap=hard_cap)
    # v6e (or unknown 128 MiB chip): needs tm >= ~640 to pass the HBM roofline.
    return dict(tm=640, th=512, wbuf=3, two_tc=False, hard_cap=hard_cap)


def _choose_hidden_tile(hidden, desired):
    """Largest multiple of 128 <= desired that divides hidden, else the full hidden."""
    if hidden % 128 != 0 or hidden <= desired:
        return hidden
    th = max(128, (desired // 128) * 128)
    while hidden % th != 0:
        th -= 128
    return th


def _working_set_bytes(tm, th, dim, x_isz, w_isz, out_isz, wbuf):
    """Actual VMEM footprint: wbuf x streamed weight tiles, 2 x x/out blocks, 1 x f32 acc."""
    return (2 * tm * dim * x_isz                       # x block: changes across i -> double buffered
            + wbuf * (dim * th + th * dim + th) * w_isz  # w1, w2, b1 tiles stream over k
            + 2 * dim * w_isz                          # b2 (constant block; conservative x2)
            + 2 * tm * dim * out_isz                   # output block
            + tm * dim * 4)                            # f32 accumulator scratch


# ----------------------------------------------------------------------------- wrapper
def feed_forward(x, w1, b1, w2, b2, *, tm=None, th=None, weight_buffers=None,
                 approximate_gelu=False):
    """x: (M, dim); w1: (dim, hidden); b1: (1, hidden); w2: (hidden, dim); b2: (1, dim).

    Fast path: pass bf16 x/w1/w2 (accumulation stays f32).
    """
    M, dim = x.shape
    hidden = w1.shape[1]
    assert w1.shape[0] == dim and w2.shape == (hidden, dim)
    assert b1.shape == (1, hidden) and b2.shape == (1, dim)

    cfg = _chip_config()
    tm = cfg["tm"] if tm is None else tm
    th = cfg["th"] if th is None else th
    wbuf = cfg["wbuf"] if weight_buffers is None else weight_buffers
    hard_cap = cfg["hard_cap"]

    x_isz = jnp.dtype(x.dtype).itemsize
    w_isz = jnp.dtype(w1.dtype).itemsize
    out_isz = x_isz

    # Token tile aligned to the dtype's sublane packing (8 rows f32, 16 bf16, 32 int8/fp8).
    align = 8 * max(1, 4 // x_isz)
    tm_eff = _round_up(min(tm, _round_up(M, align)), align)
    th_eff = _choose_hidden_tile(hidden, th)

    # Shrink tiles until the double-buffered working set fits under the per-generation cap.
    while _working_set_bytes(tm_eff, th_eff, dim, x_isz, w_isz, out_isz, 2) > hard_cap \
            and tm_eff > align:
        tm_eff = max(align, _round_up(tm_eff // 2, align))
    while _working_set_bytes(tm_eff, th_eff, dim, x_isz, w_isz, out_isz, 2) > hard_cap \
            and hidden % 128 == 0 and th_eff > 128:
        th_eff = _choose_hidden_tile(hidden, max(128, th_eff - 128))
        if th_eff <= 128:
            break

    grid_m = _cdiv(M, tm_eff)               # ragged M: partial last block, masked store
    grid_k = hidden // th_eff

    # v7x: keep both TensorCores fed from the "parallel" M axis even for small batches.
    if cfg["two_tc"] and grid_m == 1 and M > align:
        tm_eff = _round_up(_cdiv(M, 2), align)
        grid_m = _cdiv(M, tm_eff)

    # Triple-buffer streamed weight tiles only when there are enough k steps and it still fits.
    if wbuf > 2 and (grid_k < 3 or
                     _working_set_bytes(tm_eff, th_eff, dim, x_isz, w_isz, out_isz, wbuf) > hard_cap):
        wbuf = 2

    working = _working_set_bytes(tm_eff, th_eff, dim, x_isz, w_isz, out_isz, wbuf)
    vmem_limit = int(min(hard_cap, max(working + (8 << 20), 32 << 20)))

    cost = pl.CostEstimate(
        flops=4 * M * dim * hidden,                    # two matmuls
        transcendentals=M * hidden,                    # erf / tanh
        bytes_accessed=int(
            x.size * x_isz
            + grid_m * (w1.size * w_isz                # weights re-streamed once per M tile
                        + b1.size * jnp.dtype(b1.dtype).itemsize
                        + w2.size * w_isz)
            + b2.size * jnp.dtype(b2.dtype).itemsize
            + M * dim * out_isz),
    )

    kernel = functools.partial(_ffn_kernel, approximate_gelu=approximate_gelu)

    def _build(nbuf):
        wkw = {} if nbuf <= 2 else dict(pipeline_mode=pl.Buffered(nbuf))
        return pl.pallas_call(
            kernel,
            out_shape=jax.ShapeDtypeStruct((M, dim), x.dtype),
            grid_spec=pltpu.PrefetchScalarGridSpec(
                num_scalar_prefetch=0,
                grid=(grid_m, grid_k),
                in_specs=[
                    pl.BlockSpec((tm_eff, dim), lambda i, k: (i, 0)),         # x: resident across k
                    pl.BlockSpec((dim, th_eff), lambda i, k: (0, k), **wkw),  # w1 tile streams over k
                    pl.BlockSpec((1, th_eff), lambda i, k: (0, k), **wkw),    # b1 tile
                    pl.BlockSpec((th_eff, dim), lambda i, k: (k, 0), **wkw),  # w2 tile streams over k
                    pl.BlockSpec((1, dim), lambda i, k: (0, 0)),              # b2: constant
                ],
                out_specs=pl.BlockSpec((tm_eff, dim), lambda i, k: (i, 0)),
                scratch_shapes=[pltpu.VMEM((tm_eff, dim), jnp.float32)],      # f32 accumulator
            ),
            compiler_params=pltpu.CompilerParams(
                dimension_semantics=("parallel", "arbitrary"),
                vmem_limit_bytes=vmem_limit,
            ),
            cost_estimate=cost,
        )

    try:
        return _build(wbuf)(x, w1, b1, w2, b2)
    except Exception:
        if wbuf <= 2:
            raise
        return _build(2)(x, w1, b1, w2, b2)   # fall back to default double-buffering


# ----------------------------------------------------------------------------- reference & tests
def feed_forward_ref(x, w1, b1, w2, b2):
    h = x.astype(jnp.float32) @ w1.astype(jnp.float32) + b1.astype(jnp.float32)
    h = 0.5 * h * (1.0 + lax.erf(h * jnp.float32(_INV_SQRT2)))
    y = h @ w2.astype(jnp.float32) + b2.astype(jnp.float32)
    return y.astype(x.dtype)


def _make_params(key, dim, hidden, dtype=jnp.float32):
    kw1, kb1, kw2, kb2 = jax.random.split(key, 4)
    bound1 = 1.0 / math.sqrt(dim)
    w1 = jax.random.uniform(kw1, (dim, hidden), jnp.float32, -bound1, bound1).astype(dtype)
    b1 = jax.random.uniform(kb1, (1, hidden), jnp.float32, -bound1, bound1).astype(dtype)
    bound2 = 1.0 / math.sqrt(hidden)
    w2 = jax.random.uniform(kw2, (hidden, dim), jnp.float32, -bound2, bound2).astype(dtype)
    b2 = jax.random.uniform(kb2, (1, dim), jnp.float32, -bound2, bound2).astype(dtype)
    return w1, b1, w2, b2


if __name__ == "__main__":
    key = jax.random.PRNGKey(0)

    # ---- Case 1: shapes implied by the module spec (batch=2, seq=8, dim=32, hidden=64), f32 ----
    batch, seq, dim, hidden = 2, 8, 32, 64
    k0, k1 = jax.random.split(key)
    x = jax.random.normal(k0, (batch, seq, dim), dtype=jnp.float32)
    w1, b1, w2, b2 = _make_params(k1, dim, hidden)

    x2d = x.reshape(batch * seq, dim)
    out = feed_forward(x2d, w1, b1, w2, b2)
    out = jax.block_until_ready(out).reshape(batch, seq, dim)
    ref = feed_forward_ref(x2d, w1, b1, w2, b2).reshape(batch, seq, dim)
    assert out.shape == (batch, seq, dim)
    assert jnp.allclose(out, ref, atol=1e-5, rtol=1e-5), "mismatch vs reference (case 1)"

    # ---- Case 2: ragged M (partial last block, no pad/slice) + hidden-axis accumulation, f32 ----
    M2, dim2, hidden2 = 40, 128, 256
    k2, k3 = jax.random.split(k1)
    x2 = jax.random.normal(k2, (M2, dim2), dtype=jnp.float32)
    w1b, b1b, w2b, b2b = _make_params(k3, dim2, hidden2)
    out2 = feed_forward(x2, w1b, b1b, w2b, b2b, tm=16, th=128)   # 3 M tiles (last partial), 2 k tiles
    out2 = jax.block_until_ready(out2)
    ref2 = feed_forward_ref(x2, w1b, b1b, w2b, b2b)
    assert out2.shape == (M2, dim2)
    assert jnp.allclose(out2, ref2, atol=1e-4, rtol=1e-4), "mismatch vs reference (case 2)"

    # ---- Case 3: bf16 fast path (bf16 operands, f32 accumulation) ----
    M3, dim3, hidden3 = 32, 128, 256
    k4, k5 = jax.random.split(k3)
    x3 = jax.random.normal(k4, (M3, dim3), dtype=jnp.float32).astype(jnp.bfloat16)
    w1c, b1c, w2c, b2c = _make_params(k5, dim3, hidden3, dtype=jnp.bfloat16)
    out3 = feed_forward(x3, w1c, b1c, w2c, b2c)
    out3 = jax.block_until_ready(out3)
    ref3 = feed_forward_ref(x3, w1c, b1c, w2c, b2c)
    assert out3.shape == (M3, dim3) and out3.dtype == jnp.bfloat16
    assert jnp.allclose(out3.astype(jnp.float32), ref3.astype(jnp.float32),
                        atol=2e-2, rtol=2e-2), "mismatch vs reference (case 3, bf16)"

    print("KERNEL_OK")
</pallas_src>

<mosaic_0001>
module attributes {stable_mosaic.version = 11 : i64} {
  func.func @_ffn_kernel(%arg0: i32, %arg1: i32, %arg2: memref<8x32xf32, #tpu.memory_space<vmem>>, %arg3: memref<32x64xf32, #tpu.memory_space<vmem>>, %arg4: memref<1x64xf32, #tpu.memory_space<vmem>>, %arg5: memref<64x32xf32, #tpu.memory_space<vmem>>, %arg6: memref<1x32xf32, #tpu.memory_space<vmem>>, %arg7: memref<8x32xf32, #tpu.memory_space<vmem>>, %arg8: memref<8x32xf32, #tpu.memory_space<vmem>>) attributes {dimension_semantics = [#tpu.dimension_semantics<parallel>, #tpu.dimension_semantics<arbitrary>], iteration_bounds = array<i64: 2, 1>, scalar_prefetch = 0 : i64, scratch_operands = 1 : i64, tpu.core_type = #tpu.core_type<tc>, window_params = [{transform_indices = @transform_0, window_bounds = array<i64: 8, 32>}, {transform_indices = @transform_1, window_bounds = array<i64: 32, 64>}, {transform_indices = @transform_2, window_bounds = array<i64: 1, 64>}, {transform_indices = @transform_3, window_bounds = array<i64: 64, 32>}, {pipeline_mode = #tpu.pipeline_mode<synchronous>, transform_indices = @transform_4, window_bounds = array<i64: 1, 32>}, {transform_indices = @transform_5, window_bounds = array<i64: 8, 32>}]} {
    %c0_i32 = arith.constant 0 : i32
    %0 = arith.cmpi eq, %arg1, %c0_i32 : i32
    %1 = arith.extui %0 : i1 to i32
    %c0_i32_0 = arith.constant 0 : i32
    %2 = arith.cmpi ne, %1, %c0_i32_0 : i32
    scf.if %2 {
      %cst_18 = arith.constant 0.000000e+00 : f32
      %25 = vector.broadcast %cst_18 : f32 to vector<8x32xf32>
      %c0_19 = arith.constant 0 : index
      %c0_20 = arith.constant 0 : index
      %26 = vector.load %arg8[%c0_19, %c0_20] : memref<8x32xf32, #tpu.memory_space<vmem>>, vector<8x32xf32>
      tpu.vector_store %arg8[%c0_19, %c0_20], %25 {strides = array<i32>} : memref<8x32xf32, #tpu.memory_space<vmem>>, vector<8x32xf32>,
    } else {
    }
    %c0 = arith.constant 0 : index
    %c0_1 = arith.constant 0 : index
    %3 = vector.load %arg2[%c0, %c0_1] : memref<8x32xf32, #tpu.memory_space<vmem>>, vector<8x32xf32>
    %c0_2 = arith.constant 0 : index
    %c0_3 = arith.constant 0 : index
    %4 = vector.load %arg3[%c0_2, %c0_3] : memref<32x64xf32, #tpu.memory_space<vmem>>, vector<32x64xf32>
    %cst = arith.constant dense<0.000000e+00> : vector<8x64xf32>
    %5 = tpu.matmul %3, %4, %cst {dimension_numbers = #tpu.dot_dimension_numbers<[1], [0], [0], [1], [0, 0, 1, 1], [], []>} : vector<8x32xf32>, vector<32x64xf32>, vector<8x64xf32> -> vector<8x64xf32>
    %c0_4 = arith.constant 0 : index
    %c0_5 = arith.constant 0 : index
    %6 = vector.load %arg4[%c0_4, %c0_5] : memref<1x64xf32, #tpu.memory_space<vmem>>, vector<1x64xf32>
    %7 = vector.broadcast %6 : vector<1x64xf32> to vector<8x64xf32>
    %8 = arith.addf %5, %7 : vector<8x64xf32>
    %cst_6 = arith.constant 5.000000e-01 : f32
    %9 = vector.broadcast %cst_6 : f32 to vector<8x64xf32>
    %10 = arith.mulf %9, %8 : vector<8x64xf32>
    %cst_7 = arith.constant 0.707106769 : f32
    %11 = vector.broadcast %cst_7 : f32 to vector<8x64xf32>
    %12 = arith.mulf %8, %11 : vector<8x64xf32>
    %13 = math.erf %12 : vector<8x64xf32>
    %cst_8 = arith.constant 1.000000e+00 : f32
    %14 = vector.broadcast %cst_8 : f32 to vector<8x64xf32>
    %15 = arith.addf %14, %13 : vector<8x64xf32>
    %16 = arith.mulf %10, %15 : vector<8x64xf32>
    %c0_9 = arith.constant 0 : index
    %c0_10 = arith.constant 0 : index
    %17 = vector.load %arg8[%c0_9, %c0_10] : memref<8x32xf32, #tpu.memory_space<vmem>>, vector<8x32xf32>
    %c0_11 = arith.constant 0 : index
    %c0_12 = arith.constant 0 : index
    %18 = vector.load %arg5[%c0_11, %c0_12] : memref<64x32xf32, #tpu.memory_space<vmem>>, vector<64x32xf32>
    %cst_13 = arith.constant dense<0.000000e+00> : vector<8x32xf32>
    %19 = tpu.matmul %16, %18, %cst_13 {dimension_numbers = #tpu.dot_dimension_numbers<[1], [0], [0], [1], [0, 0, 1, 1], [], []>} : vector<8x64xf32>, vector<64x32xf32>, vector<8x32xf32> -> vector<8x32xf32>
    %20 = arith.addf %17, %19 : vector<8x32xf32>
    %c0_14 = arith.constant 0 : index
    %c0_15 = arith.constant 0 : index
    %21 = vector.load %arg8[%c0_14, %c0_15] : memref<8x32xf32, #tpu.memory_space<vmem>>, vector<8x32xf32>
    tpu.vector_store %arg8[%c0_14, %c0_15], %20 {strides = array<i32>} : memref<8x32xf32, #tpu.memory_space<vmem>>, vector<8x32xf32>,
    %c0_i32_16 = arith.constant 0 : i32
    %22 = arith.cmpi eq, %arg1, %c0_i32_16 : i32
    %23 = arith.extui %22 : i1 to i32
    %c0_i32_17 = arith.constant 0 : i32
    %24 = arith.cmpi ne, %23, %c0_i32_17 : i32
    scf.if %24 {
      %c0_18 = arith.constant 0 : index
      %c0_19 = arith.constant 0 : index
      %25 = vector.load %arg8[%c0_18, %c0_19] : memref<8x32xf32, #tpu.memory_space<vmem>>, vector<8x32xf32>
      %c0_20 = arith.constant 0 : index
      %c0_21 = arith.constant 0 : index
      %26 = vector.load %arg6[%c0_20, %c0_21] : memref<1x32xf32, #tpu.memory_space<vmem>>, vector<1x32xf32>
      %27 = vector.broadcast %26 : vector<1x32xf32> to vector<8x32xf32>
      %28 = arith.addf %25, %27 : vector<8x32xf32>
      %c0_22 = arith.constant 0 : index
      %c0_23 = arith.constant 0 : index
      %29 = vector.load %arg7[%c0_22, %c0_23] : memref<8x32xf32, #tpu.memory_space<vmem>>, vector<8x32xf32>
      tpu.vector_store %arg7[%c0_22, %c0_23], %28 {strides = array<i32>} : memref<8x32xf32, #tpu.memory_space<vmem>>, vector<8x32xf32>,
    } else {
    }
    return
  }
  func.func @transform_0(%arg0: i32, %arg1: i32) -> (i32, i32) {
    %c0_i32 = arith.constant 0 : i32
    %c0_i32_0 = arith.constant 0 : i32
    return %arg0, %c0_i32 : i32, i32
  }
  func.func @transform_1(%arg0: i32, %arg1: i32) -> (i32, i32) {
    %c0_i32 = arith.constant 0 : i32
    %c0_i32_0 = arith.constant 0 : i32
    return %c0_i32, %arg1 : i32, i32
  }
  func.func @transform_2(%arg0: i32, %arg1: i32) -> (i32, i32) {
    %c0_i32 = arith.constant 0 : i32
    %c0_i32_0 = arith.constant 0 : i32
    return %c0_i32, %arg1 : i32, i32
  }
  func.func @transform_3(%arg0: i32, %arg1: i32) -> (i32, i32) {
    %c0_i32 = arith.constant 0 : i32
    %c0_i32_0 = arith.constant 0 : i32
    return %arg1, %c0_i32 : i32, i32
  }
  func.func @transform_4(%arg0: i32, %arg1: i32) -> (i32, i32) {
    %c0_i32 = arith.constant 0 : i32
    %c0_i32_0 = arith.constant 0 : i32
    %c0_i32_1 = arith.constant 0 : i32
    return %c0_i32, %c0_i32_0 : i32, i32
  }
  func.func @transform_5(%arg0: i32, %arg1: i32) -> (i32, i32) {
    %c0_i32 = arith.constant 0 : i32
    %c0_i32_0 = arith.constant 0 : i32
    return %arg0, %c0_i32 : i32, i32
  }
}

</mosaic_0001>

<bundles_post_ra>
// kernel: tpu_custom_call.1
= control target key start
LH: loop header
LB: loop body
LE: loop exit
PB: predicated region body
PF: predicated region fallthrough
CT: control target
= control target key end

     0   :  { %10 = vsyncpa [#allocation4], 0  ;;  %s1015_s0 = inlined_call_operand.vmem [shape: f32[16,32], index: 0, kind: input, shape index: {}]   ;;  %s1016_s1 = inlined_call_operand.vmem [shape: f32[32,64], index: 1, kind: input, shape index: {}]   ;;  %s1017_s2 = inlined_call_operand.vmem [shape: f32[1,64], index: 2, kind: input, shape index: {}]   ;;  %s1018_s3 = inlined_call_operand.vmem [shape: f32[64,32], index: 3, kind: input, shape index: {}]   ;;  %s1019_s4 = inlined_call_operand.vmem [shape: f32[1,32], index: 4, kind: input, shape index: {}]   ;;  %s1020_s5 = inlined_call_operand.hbm [shape: f32[16,32], index: 5, kind: output, shape index: {}]  }
   0x1   :  { %12 = vsyncpa [#allocation4 + $0x1], 0  ;;  %s857_s18 = smov 0   ;;  %s859_s19 = smov 0  }
   0x2   :  { %s861_s20 = smov 0   ;;  %s863_s21 = smov 0  }
   0x3   :  { %s865_s22 = smov 0   ;;  %s867_s23 = smov 0  }
   0x4 LB: > { %s603_s24 = sadd.s32 4294967295, %s821_s23   ;;  %s604_s25 = sadd.s32 4294967294, %s821_s23   ;;  %s821_s23 = sphi %s867_s23, %s18_s23   ;;  %s817_s22 = sphi %s865_s22, %s1027_s22   ;;  %s813_s21 = sphi %s863_s21, %s1026_s21   ;;  %s809_s20 = sphi %s861_s20, %s1025_s20   ;;  %s805_s19 = sphi %s859_s19, %s1024_s19   ;;  %s801_s18 = sphi %s857_s18, %s1023_s18  }
   0x5   : > { %s30_s26 = sadd.s32 1, %s817_s22  ;;  %s162_s27 = sadd.s32 1, %s809_s20 }
   0x6   : > { %p32_p0 = scmp.ge.s32.totalorder %s30_s26, 2  ;;  %p172_p1 = scmp.ne.s32.totalorder %s809_s20, %s805_s19 }
   0x7   : > { %p173_p2 = scmp.eq.s32.totalorder %s603_s24, 1  ;;  %p178_p3 = scmp.ne.s32.totalorder %s805_s19, %s801_s18 }
   0x8   : > { %s1029_s26 = smov (%p32_p0, %s30_s26), 0  ;;  %p179_p5 = scmp.eq.s32.totalorder %s604_s25, 1 }
   0x9   : > { %p897_p4 = por %p173_p2, %p172_p1  ;;  %s159_s29 = ssub.s32 %s817_s22, %s1029_s26 }
   0xa   : > { %p610_p6 = scmp.ge.s32.totalorder %s821_s23, 1  ;;  %p160_p7 = scmp.eq.s32.totalorder %s159_s29, 0 }
   0xb   : > { %p904_p8 = por %p179_p5, %p178_p3  ;;  %p229_p9 = scmp.lt.s32.totalorder %s821_s23, 3 }
   0xc   : > { %s910_s6 = scalar_select %p160_p7, %s809_s20, %s162_s27  }
   0xd   : > { %p230_p10 = pnand %p610_p6, %p229_p9 }
   0xe   : > { %v292_v0 = vld [vmem:[%s1016_s1] sm:$0xff] (!%p230_p10)  ;;  %v293_v1 = vld [vmem:[%s1016_s1 + $0x8] sm:$0xff] (!%p230_p10)  ;;  %v294_v2 = vld [vmem:[%s1016_s1 + $0x10] sm:$0xff] (!%p230_p10)  ;;  %v823_v3 = vmov (!%p230_p10), 0.0|0.0   ;;  %vm824_vm0 = vmmov (!%p230_p10), 0   ;;  %v825_v6 = vmov (!%p230_p10), 0.0  }
   0xf   : > { %233 = sbr.rel (%p230_p10) target bundleno = 496 (0x1f0), region = 40  ;;  %665 = vmatprep.subr.bf16.mxu0 (!%p230_p10), %v823_v3  ;;  %v666_v4 = vpack.c.bf16 (!%p230_p10), %v293_v1, %v292_v0  ;;  %v295_v5 = vld [vmem:[%s1016_s1 + $0x18] sm:$0xff] (!%p230_p10)  ;;  %643 = vmatprep.mubr.msk.f32.mxu0 (!%p230_p10), %vm824_vm0, %v825_v6  ;;  %p268_p11 = scmp.lt.s32.totalorder (!%p230_p10), %s813_s21, 1  ;;  %vm289_vm1 = vcmask (!%p230_p10), 261120   ;;  %v383_v9 = vld [vmem:[%s1018_s3] sm:$0xff] (!%p230_p10)  ;;  %v384_v10 = vld [vmem:[%s1018_s3 + $0x8] sm:$0xff] (!%p230_p10) }
  0x10   : > { %290 = vst.msk [vmem:[#allocation2] sm:$0xff] (!%p230_p10), %vm289_vm1, %v825_v6  ;;  %671 = vmatprep.subr.bf16.mxu1 (!%p230_p10), %v823_v3  ;;  %662 = vmatprep.mubr.msk.f32.mxu1 (!%p230_p10), %vm824_vm0, %v825_v6  ;;  %v669_v7 = vpack.c.bf16 (!%p230_p10), %v295_v5, %v294_v2  ;;  %v672_v11 = vpack.c.bf16 (!%p230_p10), %v384_v10, %v383_v9  ;;  %v385_v12 = vld [vmem:[%s1018_s3 + $0x10] sm:$0xff] (!%p230_p10)  ;;  %v386_v13 = vld [vmem:[%s1018_s3 + $0x18] sm:$0xff] (!%p230_p10)  ;;  %v387_v15 = vld [vmem:[%s1018_s3 + $0x20] sm:$0xff] (!%p230_p10)  ;;  %vm391_vm2 = vcmask (!%p230_p10), 523264   ;;  %s265_s8 = sand.u32 (!%p230_p10), 1, %s805_s19  }
  0x11   : > { %667 = vmatpush3.bf16.msra.mxu0 (!%p230_p10), %v666_v4  ;;  %v675_v14 = vpack.c.bf16 (!%p230_p10), %v386_v13, %v385_v12  ;;  %v388_v16 = vld [vmem:[%s1018_s3 + $0x28] sm:$0xff] (!%p230_p10)  ;;  %v389_v18 = vld [vmem:[%s1018_s3 + $0x30] sm:$0xff] (!%p230_p10)  ;;  %v390_v19 = vld [vmem:[%s1018_s3 + $0x38] sm:$0xff] (!%p230_p10)  ;;  %s611_s9 = sshll.u32 (!%p230_p10), %s265_s8, 3  ;;  %s618_s12 = sshll.u32 (!%p230_p10), %s813_s21, 7 }
  0x12   : > { %668 = vmatprep.subr.bf16.mxu0 (!%p230_p10), %v823_v3  ;;  %673 = vmatpush3.bf16.msra.mxu1 (!%p230_p10), %v672_v11  ;;  %v678_v17 = vpack.c.bf16 (!%p230_p10), %v388_v16, %v387_v15  ;;  %v681_v20 = vpack.c.bf16 (!%p230_p10), %v390_v19, %v389_v18  ;;  %v613_v21 = vld [vmem:[%s1017_s2] ss:$0 sm:$0xff] (!%p230_p10)  ;;  %s267_s13 = scalar_lea.vmem (!%p230_p10), [#allocation3], %s611_s9  ;;  %s967_s17 = scalar_lea.hbm (!%p230_p10), %s1020_s5, %s618_s12 }
  0x13   : > { %674 = vmatprep.subr.bf16.mxu1 (!%p230_p10), %v823_v3  ;;  %v616_v34 = vld [vmem:[%s1019_s4] ss:$0 sm:$0xff] (!%p230_p10)  ;;  %s494_s14 = sshll.u32 (!%p230_p10), %s267_s13, 4  ;;  %s481_s24 = scalar_lea.sflag (!%p230_p10), [#allocation4], %s265_s8  ;;  %s969_s14 = int_to_ptr.vmem [resolvable:$true] %s494_s14 }
  0x15   : > { %670 = vmatpush3.bf16.msra.mxu0 (!%p230_p10), %v669_v7 }
  0x16   : > { %s269_s15 = scalar_select %p268_p11, %s813_s21, 1  ;;  %676 = vmatpush3.bf16.msra.mxu1 %v675_v14 }
  0x17   : > { %677 = vmatprep.subr.bf16.mxu1 %v823_v3  ;;  %v382_v30 = vld [vmem:[#allocation2] sm:$0xff]  ;;  %s826_s21 = smov [#allocation3]  }
  0x18   : > { %s612_s16 = sshll.u32 %s269_s15, 3  ;;  %s747_s27 = sshll.u32 %s826_s21, 4  ;;  %s748_s27 = int_to_ptr.vmem [resolvable:$false] %s747_s27 }
  0x19   : > { %s271_s25 = scalar_lea.vmem %s1015_s0, %s612_s16  ;;  %s749_s29 = scalar_lea.vmem %s748_s27, 256 }
  0x1a   : > { %v291_v8 = vld [vmem:[%s271_s25] sm:$0xff]  ;;  %679 = vmatpush3.bf16.msra.mxu1 %v678_v17  ;;  %s743_s25 = scalar_lea.vmem %s969_s14, 128  ;;  %p750_p1 = scmp.lt.s32.totalorder %s969_s14, %s748_s27 }
  0x1b   : > { %644 = vmatmul.mubr.msk.f32.vlgmr.msra.gmra.mrb[0].mxu0 %vm289_vm1, %v291_v8  ;;  %680 = vmatprep.subr.bf16.mxu1 %v823_v3  ;;  %p744_p12 = scmp.ne.s32.totalorder %s969_s14, %s743_s25  ;;  %p751_p2 = scmp.lt.s32.totalorder %s749_s29, %s743_s25 }
  0x1d   : > { %p745_p13 = pnand %p744_p12, %p897_p4  ;;  %p752_p3 = por %p751_p2, %p750_p1 }
  0x1e   : > { %682 = vmatpush3.bf16.msra.mxu1 %v681_v20 }
  0x1f   : > { %p746_p0 = pneg %p745_p13 }
  0x21   : > { %p753_p5 = pnand %p752_p3, %p746_p0 }
  0xee   : > { %v373_v22 = vpop.f32.mrb[0].mxu0 }
  0xef   : > { %v374_v23 = vadd.f32 %v613_v21, %v373_v22  ;;  %v645_v24 = vpop.f32.mrb[1].mxu0 }
  0xf1   : > { %v378_v25 = vmul.f32 0.70710677, %v374_v23  ;;  %v377_v27 = vmul.f32 0.5, %v374_v23 }
  0xf3   : > { %741 = verf.f32 %v378_v25 }
  0xfd   : > { %v742_v26 = vpop.eup %741 }
  0xfe   : > { %v380_v28 = vadd.f32 1.0, %v742_v26 }
 0x100   : > { %v381_v29 = vmul.f32 %v380_v28, %v377_v27 }
 0x102   : > { %663 = vmatmul.mubr.msk.f32.vlgmr.msra.gmra.mrb[0].mxu1 %vm391_vm2, %v381_v29 }
 0x1d5   : > { %v461_v31 = vpop.f32.mrb[0].mxu1 }
 0x1d6   : > { %v465_v32 = vadd.f32 %v461_v31, %v382_v30  ;;  %v664_v33 = vpop.f32.mrb[1].mxu1 }
 0x1d8   : > { %466 = vst.msk [vmem:[#allocation2] sm:$0xff] %vm289_vm1, %v465_v32 }
 0x1df   : > { %v470_v35 = vld [vmem:[#allocation2] sm:$0xff] }
 0x1e0   : > { %v478_v36 = vadd.f32 %v616_v34, %v470_v35 }
 0x1e2   : > { %479 = vst.msk [vmem:[%s267_s13] sm:$0xff] %vm289_vm1, %v478_v36 }
 0x1e3   : > { %756 = shalt.err (!%p753_p5)
}
 0x1e4   : > { %s757_s7 = scalar_lea.hbm %s967_s17, 128  ;;  %s761_s10 = scalar_lea.hbm %s1020_s5, 256 }
 0x1e5   : > { %p758_p6 = scmp.ne.s32.totalorder %s967_s17, %s757_s7  ;;  %p762_p10 = scmp.lt.u32.totalorder %s967_s17, %s1020_s5 }
 0x1e6   : > { %p763_p11 = scmp.lt.u32.totalorder %s761_s10, %s757_s7  ;;  %p765_p13 = scmp.lt.u32.totalorder %s757_s7, %s967_s17 }
 0x1e7   : > { %p759_p7 = pnand %p758_p6, %p897_p4 }
 0x1e8   : > { %p764_p12 = por %p763_p11, %p762_p10 }
 0x1e9   : > { %p760_p9 = pneg %p759_p7 }
 0x1ea   : > { %p766_p0 = por %p765_p13, %p764_p12 }
 0x1ec   : > { %p767_p1 = pnand %p766_p0, %p760_p9 }
 0x1ee   : > { %770 = shalt.err (!%p767_p1)
}
 0x1ef   : > { %683 = dma.vmem_to_hbm [thread:$0]  (%p897_p4), %s969_s14, 128, %s967_s17, %s481_s24  }
 0x1f0 PF: > { %p689_p2 = scmp.ge.s32.totalorder %s821_s23, 2  ;;  %s506_s13 = sand.u32 1, %s801_s18  }
 0x1f1   : > { %s507_s15 = scalar_lea.sflag [#allocation4], %s506_s13 }
 0x1f2   : > { %p686_p3 = pnand %p689_p2, %p904_p8 }
 0x1f4   : > { %796 = dma.done.wait (!%p686_p3), %s507_s15, 128  }
 0x1f5   : > { %798 = vsyncadd (!%p686_p3), %s507_s15, 4294967168  ;;  %s18_s23 = sadd.s32 1, %s821_s23   ;;  %s1023_s18 = smov %s805_s19 }
 0x1f6   : > { %p15_p5 = scmp.ge.s32.totalorder %s18_s23, 4   ;;  %s1024_s19 = smov %s809_s20 }
 0x1f7   : > { %s1025_s20 = smov %s910_s6  ;;  %s1026_s21 = smov %s817_s22 }
 0x1f8   : > { %s1027_s22 = smov %s1029_s26  ;;  %17 = sbr.rel (!%p15_p5) target bundleno = 4 (0x4), region = 92 }
 0x1ff   :  { %512 = vsyncpa [#allocation4], 1 }
 0x200   :  { %514 = vsyncpa [#allocation4 + $0x1], 1 }

</bundles_post_ra>
